<compile_context>
chip_gen: v6e
topology: v6e:2x2x1
jax: 0.10.0
libtpu: 0.0.40
codegen_flags: <defaults>
</compile_context>

<pallas_src>
import functools
import math

import jax
import jax.numpy as jnp
from jax.experimental import pallas as pl
from jax.experimental.pallas import tpu as pltpu


def _round_up(x, m):
    return (x + m - 1) // m * m


def _qkv_proj_kernel(x_ref, w_ref, b_ref, q_ref, k_ref, v_ref, *, scale):
    """Fused Q/K/V projection for one tile of rows.

    x_ref: (rt, Hp) bf16, w_ref: (Hp, 3*Hp) bf16, b_ref: (1, 3*Hp) f32.
    Outputs are bf16; the attention scale is pre-folded into Q (cheaper than
    scaling the (L, L) score matrix later).
    """
    hp = q_ref.shape[-1]
    qkv = jnp.dot(x_ref[...], w_ref[...], preferred_element_type=jnp.float32)
    qkv = qkv + b_ref[...]
    q_ref[...] = (qkv[:, :hp] * scale).astype(q_ref.dtype)
    k_ref[...] = qkv[:, hp:2 * hp].astype(k_ref.dtype)
    v_ref[...] = qkv[:, 2 * hp:3 * hp].astype(v_ref.dtype)


def _attn_kernel(q_ref, k_ref, v_ref, o_ref):
    """One (query-tile, kv-tile) grid step.

    q_ref: (B, tq, Hp) bf16 (already scaled); k_ref/v_ref: (B, tm, Hp) bf16.
    o_ref: (B, tq, Hp) f32, resident across the kv grid axis (accumulator).
    """
    mi = pl.program_id(1)
    batch = q_ref.shape[0]

    @pl.when(mi == 0)
    def _():
        o_ref[...] = jnp.zeros_like(o_ref)

    # Per-batch 2-D MXU dots (a batched dot_general lowers to B matmuls
    # anyway; keeping them explicit keeps every MXU call a full-width
    # (tq, Hp) x (Hp, tm) 2-D tile).  scores[b] = (Q_b * scale) @ K_b^T.
    scores = []
    for b in range(batch):
        s_b = jax.lax.dot_general(
            q_ref[b], k_ref[b],
            dimension_numbers=(((1,), (1,)), ((), ())),
            preferred_element_type=jnp.float32)
        scores.append(s_b)

    # Legacy nn.Softmax() implicit dim on a 3-D tensor => softmax over dim 0
    # (the batch axis).  Softmax math kept in f32 (v5e has no bf16 VPU/EUP).
    m = scores[0]
    for s_b in scores[1:]:
        m = jnp.maximum(m, s_b)
    exps = [jnp.exp(s_b - m) for s_b in scores]            # EUP, f32
    denom = exps[0]
    for e_b in exps[1:]:
        denom = denom + e_b
    inv = pl.reciprocal(denom, approx=True)                # EUP, not a VPU divide

    # Dropout is identity at inference.
    # TODO(synk): training-mode dropout (RNG mask) not implemented.
    for b in range(batch):
        attn_b = (exps[b] * inv).astype(v_ref.dtype)       # bf16 for the MXU
        o_ref[b] += jnp.dot(attn_b, v_ref[b],
                            preferred_element_type=jnp.float32)


def prepare_attn_params(wq, bq, wk, bk, wv, bv):
    """One-time (model-load) prep: transpose to (in, out), fuse Q/K/V weights,
    zero-pad the hidden dim to a lane-dense multiple of 128, cast to bf16."""
    h = wq.shape[0]
    hp = _round_up(h, 128)

    def pad_wt(w):  # (out, in) -> (in, out), zero-padded to (hp, hp)
        return jnp.pad(w.T.astype(jnp.float32), ((0, hp - h), (0, hp - h)))

    def pad_b(b):
        return jnp.pad(b.astype(jnp.float32), (0, hp - h))

    wqkv = jnp.concatenate([pad_wt(wq), pad_wt(wk), pad_wt(wv)],
                           axis=1).astype(jnp.bfloat16)          # (hp, 3*hp)
    bqkv = jnp.concatenate([pad_b(bq), pad_b(bk), pad_b(bv)]
                           ).reshape(1, 3 * hp)                   # (1, 3*hp) f32
    return wqkv, bqkv


def attn_blk(x, wqkv, bqkv, *, n_hid):
    """x: (B, L, n_hid) f32; wqkv/bqkv come from prepare_attn_params."""
    B, L, H = x.shape
    assert H == n_hid
    Hp = wqkv.shape[0]

    # Tile budget: lane-dense Hp; query/key tiles of up to 256 rows (fits
    # comfortably under v7x's 64 MiB VMEM with double buffering; v5e/v6e
    # could go larger).
    tile_l = min(256, _round_up(L, 8))
    Lp = _round_up(L, tile_l)

    # Wrapper-side padding + flattening (layout plumbing stays out of kernels).
    x_p = jnp.pad(x, ((0, 0), (0, Lp - L), (0, Hp - H))).astype(jnp.bfloat16)
    x2d = x_p.reshape(B * Lp, Hp)
    rows = B * Lp

    vmem_limit = 48 * 1024 * 1024
    scale = 1.0 / math.sqrt(n_hid)

    # --- Kernel 1: fused QKV projection (K/V computed exactly once). ---
    q2d, k2d, v2d = pl.pallas_call(
        functools.partial(_qkv_proj_kernel, scale=scale),
        out_shape=tuple(jax.ShapeDtypeStruct((rows, Hp), jnp.bfloat16)
                        for _ in range(3)),
        grid=(rows // tile_l,),
        in_specs=[
            pl.BlockSpec((tile_l, Hp), lambda i: (i, 0)),
            pl.BlockSpec((Hp, 3 * Hp), lambda i: (0, 0)),
            pl.BlockSpec((1, 3 * Hp), lambda i: (0, 0)),
        ],
        out_specs=tuple(pl.BlockSpec((tile_l, Hp), lambda i: (i, 0))
                        for _ in range(3)),
        compiler_params=pltpu.CompilerParams(
            dimension_semantics=("parallel",),
            vmem_limit_bytes=vmem_limit),
    )(x2d, wqkv, bqkv)

    q = q2d.reshape(B, Lp, Hp)
    k = k2d.reshape(B, Lp, Hp)
    v = v2d.reshape(B, Lp, Hp)

    # --- Kernel 2: attention, gridded over (query tiles, key/value tiles). ---
    out_p = pl.pallas_call(
        _attn_kernel,
        out_shape=jax.ShapeDtypeStruct((B, Lp, Hp), jnp.float32),
        grid=(Lp // tile_l, Lp // tile_l),
        in_specs=[
            pl.BlockSpec((B, tile_l, Hp), lambda qi, mi: (0, qi, 0)),
            pl.BlockSpec((B, tile_l, Hp), lambda qi, mi: (0, mi, 0)),
            pl.BlockSpec((B, tile_l, Hp), lambda qi, mi: (0, mi, 0)),
        ],
        out_specs=pl.BlockSpec((B, tile_l, Hp), lambda qi, mi: (0, qi, 0)),
        compiler_params=pltpu.CompilerParams(
            dimension_semantics=("parallel", "arbitrary"),
            vmem_limit_bytes=vmem_limit),
    )(q, k, v)

    return out_p[:, :L, :H].astype(x.dtype)


def attn_blk_reference(x, wq, bq, wk, bk, wv, bv):
    """Pure-JAX f32 reference mirroring the PyTorch forward (eval mode)."""
    H = x.shape[-1]
    q = x @ wq.T + bq
    k = x @ wk.T + bk
    v = x @ wv.T + bv
    scores = jnp.einsum("bld,bmd->blm", q, k) / jnp.sqrt(jnp.float32(H))
    attn = jax.nn.softmax(scores, axis=0)  # legacy implicit dim=0 for 3-D input
    return jnp.einsum("blm,bmh->blh", attn, v)


if __name__ == "__main__":
    B, L, H = 2, 8, 32  # batch, seq, n_hid

    key = jax.random.PRNGKey(0)
    kx, kq, kbq, kk, kbk, kv, kbv = jax.random.split(key, 7)
    bound = 1.0 / math.sqrt(H)  # PyTorch nn.Linear default init range

    x = jax.random.normal(kx, (B, L, H), dtype=jnp.float32)
    wq = jax.random.uniform(kq, (H, H), jnp.float32, -bound, bound)
    bq = jax.random.uniform(kbq, (H,), jnp.float32, -bound, bound)
    wk = jax.random.uniform(kk, (H, H), jnp.float32, -bound, bound)
    bk = jax.random.uniform(kbk, (H,), jnp.float32, -bound, bound)
    wv = jax.random.uniform(kv, (H, H), jnp.float32, -bound, bound)
    bv = jax.random.uniform(kbv, (H,), jnp.float32, -bound, bound)

    # Weight fusion / transpose / padding done once, outside the per-call path.
    wqkv, bqkv = prepare_attn_params(wq, bq, wk, bk, wv, bv)

    fwd = jax.jit(attn_blk, static_argnames=("n_hid",))
    out = fwd(x, wqkv, bqkv, n_hid=H)
    out = jax.block_until_ready(out)

    ref = attn_blk_reference(x, wq, bq, wk, bk, wv, bv)
    assert out.shape == (B, L, H)
    # bf16 MXU operands + approx reciprocal -> looser tolerance than pure f32.
    assert jnp.allclose(out, ref, atol=3e-2, rtol=3e-2), \
        "mismatch vs pure-JAX reference"

    print("KERNEL_OK")
</pallas_src>

<mosaic_0001>
module attributes {stable_mosaic.version = 11 : i64} {
  func.func @_attn_kernel(%arg0: i32, %arg1: i32, %arg2: memref<2x8x128xbf16, #tpu.memory_space<vmem>>, %arg3: memref<2x8x128xbf16, #tpu.memory_space<vmem>>, %arg4: memref<2x8x128xbf16, #tpu.memory_space<vmem>>, %arg5: memref<2x8x128xf32, #tpu.memory_space<vmem>>) attributes {dimension_semantics = [#tpu.dimension_semantics<parallel>, #tpu.dimension_semantics<arbitrary>], iteration_bounds = array<i64: 1, 1>, scalar_prefetch = 0 : i64, scratch_operands = 0 : i64, tpu.core_type = #tpu.core_type<tc>, window_params = [{transform_indices = @transform_0, window_bounds = array<i64: 2, 8, 128>}, {transform_indices = @transform_1, window_bounds = array<i64: 2, 8, 128>}, {transform_indices = @transform_2, window_bounds = array<i64: 2, 8, 128>}, {transform_indices = @transform_3, window_bounds = array<i64: 2, 8, 128>}]} {
    %c0_i32 = arith.constant 0 : i32
    %0 = arith.cmpi eq, %arg1, %c0_i32 : i32
    %1 = arith.extui %0 : i1 to i32
    %c0_i32_0 = arith.constant 0 : i32
    %2 = arith.cmpi ne, %1, %c0_i32_0 : i32
    scf.if %2 {
      %cst_32 = arith.constant 0.000000e+00 : f32
      %42 = vector.broadcast %cst_32 : f32 to vector<2x8x128xf32>
      %c0_33 = arith.constant 0 : index
      %c0_34 = arith.constant 0 : index
      %c0_35 = arith.constant 0 : index
      %43 = vector.load %arg5[%c0_33, %c0_34, %c0_35] : memref<2x8x128xf32, #tpu.memory_space<vmem>>, vector<2x8x128xf32>
      tpu.vector_store %arg5[%c0_33, %c0_34, %c0_35], %42 {strides = array<i32>} : memref<2x8x128xf32, #tpu.memory_space<vmem>>, vector<2x8x128xf32>,
    } else {
    }
    %c0 = arith.constant 0 : index
    %c0_1 = arith.constant 0 : index
    %c0_2 = arith.constant 0 : index
    %3 = vector.load %arg2[%c0, %c0_1, %c0_2] : memref<2x8x128xbf16, #tpu.memory_space<vmem>>, vector<1x8x128xbf16>
    %4 = vector.shape_cast %3 : vector<1x8x128xbf16> to vector<8x128xbf16>
    %c0_3 = arith.constant 0 : index
    %c0_4 = arith.constant 0 : index
    %c0_5 = arith.constant 0 : index
    %5 = vector.load %arg3[%c0_3, %c0_4, %c0_5] : memref<2x8x128xbf16, #tpu.memory_space<vmem>>, vector<1x8x128xbf16>
    %6 = vector.shape_cast %5 : vector<1x8x128xbf16> to vector<8x128xbf16>
    %cst = arith.constant dense<0.000000e+00> : vector<8x8xf32>
    %7 = tpu.matmul %4, %6, %cst {dimension_numbers = #tpu.dot_dimension_numbers<[1], [1], [0], [0], [0, 0, 1, 0], [], []>} : vector<8x128xbf16>, vector<8x128xbf16>, vector<8x8xf32> -> vector<8x8xf32>
    %c1 = arith.constant 1 : index
    %c0_6 = arith.constant 0 : index
    %c0_7 = arith.constant 0 : index
    %8 = vector.load %arg2[%c1, %c0_6, %c0_7] : memref<2x8x128xbf16, #tpu.memory_space<vmem>>, vector<1x8x128xbf16>
    %9 = vector.shape_cast %8 : vector<1x8x128xbf16> to vector<8x128xbf16>
    %c1_8 = arith.constant 1 : index
    %c0_9 = arith.constant 0 : index
    %c0_10 = arith.constant 0 : index
    %10 = vector.load %arg3[%c1_8, %c0_9, %c0_10] : memref<2x8x128xbf16, #tpu.memory_space<vmem>>, vector<1x8x128xbf16>
    %11 = vector.shape_cast %10 : vector<1x8x128xbf16> to vector<8x128xbf16>
    %cst_11 = arith.constant dense<0.000000e+00> : vector<8x8xf32>
    %12 = tpu.matmul %9, %11, %cst_11 {dimension_numbers = #tpu.dot_dimension_numbers<[1], [1], [0], [0], [0, 0, 1, 0], [], []>} : vector<8x128xbf16>, vector<8x128xbf16>, vector<8x8xf32> -> vector<8x8xf32>
    %13 = arith.maximumf %7, %12 : vector<8x8xf32>
    %14 = arith.subf %7, %13 : vector<8x8xf32>
    %15 = math.exp %14 : vector<8x8xf32>
    %16 = arith.subf %12, %13 : vector<8x8xf32>
    %17 = math.exp %16 : vector<8x8xf32>
    %18 = arith.addf %15, %17 : vector<8x8xf32>
    %19 = tpu.reciprocal %18 {approx = true} : vector<8x8xf32> -> vector<8x8xf32>
    %20 = arith.mulf %15, %19 : vector<8x8xf32>
    %21 = arith.truncf %20 : vector<8x8xf32> to vector<8x8xbf16>
    %c0_12 = arith.constant 0 : index
    %c0_13 = arith.constant 0 : index
    %c0_14 = arith.constant 0 : index
    %22 = vector.load %arg5[%c0_12, %c0_13, %c0_14] : memref<2x8x128xf32, #tpu.memory_space<vmem>>, vector<1x8x128xf32>
    %23 = vector.shape_cast %22 : vector<1x8x128xf32> to vector<8x128xf32>
    %c0_15 = arith.constant 0 : index
    %c0_16 = arith.constant 0 : index
    %c0_17 = arith.constant 0 : index
    %24 = vector.load %arg4[%c0_15, %c0_16, %c0_17] : memref<2x8x128xbf16, #tpu.memory_space<vmem>>, vector<1x8x128xbf16>
    %25 = vector.shape_cast %24 : vector<1x8x128xbf16> to vector<8x128xbf16>
    %cst_18 = arith.constant dense<0.000000e+00> : vector<8x128xf32>
    %26 = tpu.matmul %21, %25, %cst_18 {dimension_numbers = #tpu.dot_dimension_numbers<[1], [0], [0], [1], [0, 0, 1, 1], [], []>} : vector<8x8xbf16>, vector<8x128xbf16>, vector<8x128xf32> -> vector<8x128xf32>
    %27 = arith.addf %23, %26 : vector<8x128xf32>
    %c0_19 = arith.constant 0 : index
    %c0_20 = arith.constant 0 : index
    %c0_21 = arith.constant 0 : index
    %28 = vector.load %arg5[%c0_19, %c0_20, %c0_21] : memref<2x8x128xf32, #tpu.memory_space<vmem>>, vector<1x8x128xf32>
    %29 = vector.shape_cast %28 : vector<1x8x128xf32> to vector<8x128xf32>
    %30 = vector.shape_cast %27 : vector<8x128xf32> to vector<1x8x128xf32>
    tpu.vector_store %arg5[%c0_19, %c0_20, %c0_21], %30 {strides = array<i32>} : memref<2x8x128xf32, #tpu.memory_space<vmem>>, vector<1x8x128xf32>,
    %31 = arith.mulf %17, %19 : vector<8x8xf32>
    %32 = arith.truncf %31 : vector<8x8xf32> to vector<8x8xbf16>
    %c1_22 = arith.constant 1 : index
    %c0_23 = arith.constant 0 : index
    %c0_24 = arith.constant 0 : index
    %33 = vector.load %arg5[%c1_22, %c0_23, %c0_24] : memref<2x8x128xf32, #tpu.memory_space<vmem>>, vector<1x8x128xf32>
    %34 = vector.shape_cast %33 : vector<1x8x128xf32> to vector<8x128xf32>
    %c1_25 = arith.constant 1 : index
    %c0_26 = arith.constant 0 : index
    %c0_27 = arith.constant 0 : index
    %35 = vector.load %arg4[%c1_25, %c0_26, %c0_27] : memref<2x8x128xbf16, #tpu.memory_space<vmem>>, vector<1x8x128xbf16>
    %36 = vector.shape_cast %35 : vector<1x8x128xbf16> to vector<8x128xbf16>
    %cst_28 = arith.constant dense<0.000000e+00> : vector<8x128xf32>
    %37 = tpu.matmul %32, %36, %cst_28 {dimension_numbers = #tpu.dot_dimension_numbers<[1], [0], [0], [1], [0, 0, 1, 1], [], []>} : vector<8x8xbf16>, vector<8x128xbf16>, vector<8x128xf32> -> vector<8x128xf32>
    %38 = arith.addf %34, %37 : vector<8x128xf32>
    %c1_29 = arith.constant 1 : index
    %c0_30 = arith.constant 0 : index
    %c0_31 = arith.constant 0 : index
    %39 = vector.load %arg5[%c1_29, %c0_30, %c0_31] : memref<2x8x128xf32, #tpu.memory_space<vmem>>, vector<1x8x128xf32>
    %40 = vector.shape_cast %39 : vector<1x8x128xf32> to vector<8x128xf32>
    %41 = vector.shape_cast %38 : vector<8x128xf32> to vector<1x8x128xf32>
    tpu.vector_store %arg5[%c1_29, %c0_30, %c0_31], %41 {strides = array<i32>} : memref<2x8x128xf32, #tpu.memory_space<vmem>>, vector<1x8x128xf32>,
    return
  }
  func.func @transform_0(%arg0: i32, %arg1: i32) -> (i32, i32, i32) {
    %c0_i32 = arith.constant 0 : i32
    %c0_i32_0 = arith.constant 0 : i32
    %c0_i32_1 = arith.constant 0 : i32
    return %c0_i32, %arg0, %c0_i32_0 : i32, i32, i32
  }
  func.func @transform_1(%arg0: i32, %arg1: i32) -> (i32, i32, i32) {
    %c0_i32 = arith.constant 0 : i32
    %c0_i32_0 = arith.constant 0 : i32
    %c0_i32_1 = arith.constant 0 : i32
    return %c0_i32, %arg1, %c0_i32_0 : i32, i32, i32
  }
  func.func @transform_2(%arg0: i32, %arg1: i32) -> (i32, i32, i32) {
    %c0_i32 = arith.constant 0 : i32
    %c0_i32_0 = arith.constant 0 : i32
    %c0_i32_1 = arith.constant 0 : i32
    return %c0_i32, %arg1, %c0_i32_0 : i32, i32, i32
  }
  func.func @transform_3(%arg0: i32, %arg1: i32) -> (i32, i32, i32) {
    %c0_i32 = arith.constant 0 : i32
    %c0_i32_0 = arith.constant 0 : i32
    %c0_i32_1 = arith.constant 0 : i32
    return %c0_i32, %arg0, %c0_i32_0 : i32, i32, i32
  }
}

module attributes {stable_mosaic.version = 11 : i64} {
  func.func @_qkv_proj_kernel(%arg0: i32, %arg1: memref<8x128xbf16, #tpu.memory_space<vmem>>, %arg2: memref<128x384xbf16, #tpu.memory_space<vmem>>, %arg3: memref<1x384xf32, #tpu.memory_space<vmem>>, %arg4: memref<8x128xbf16, #tpu.memory_space<vmem>>, %arg5: memref<8x128xbf16, #tpu.memory_space<vmem>>, %arg6: memref<8x128xbf16, #tpu.memory_space<vmem>>) attributes {dimension_semantics = [#tpu.dimension_semantics<parallel>], iteration_bounds = array<i64: 2>, scalar_prefetch = 0 : i64, scratch_operands = 0 : i64, tpu.core_type = #tpu.core_type<tc>, window_params = [{transform_indices = @transform_0, window_bounds = array<i64: 8, 128>}, {pipeline_mode = #tpu.pipeline_mode<synchronous>, transform_indices = @transform_1, window_bounds = array<i64: 128, 384>}, {pipeline_mode = #tpu.pipeline_mode<synchronous>, transform_indices = @transform_2, window_bounds = array<i64: 1, 384>}, {transform_indices = @transform_3, window_bounds = array<i64: 8, 128>}, {transform_indices = @transform_4, window_bounds = array<i64: 8, 128>}, {transform_indices = @transform_5, window_bounds = array<i64: 8, 128>}]} {
    %c0 = arith.constant 0 : index
    %c0_0 = arith.constant 0 : index
    %0 = vector.load %arg1[%c0, %c0_0] : memref<8x128xbf16, #tpu.memory_space<vmem>>, vector<8x128xbf16>
    %c0_1 = arith.constant 0 : index
    %c0_2 = arith.constant 0 : index
    %1 = vector.load %arg2[%c0_1, %c0_2] : memref<128x384xbf16, #tpu.memory_space<vmem>>, vector<128x384xbf16>
    %cst = arith.constant dense<0.000000e+00> : vector<8x384xf32>
    %2 = tpu.matmul %0, %1, %cst {dimension_numbers = #tpu.dot_dimension_numbers<[1], [0], [0], [1], [0, 0, 1, 1], [], []>} : vector<8x128xbf16>, vector<128x384xbf16>, vector<8x384xf32> -> vector<8x384xf32>
    %c0_3 = arith.constant 0 : index
    %c0_4 = arith.constant 0 : index
    %3 = vector.load %arg3[%c0_3, %c0_4] : memref<1x384xf32, #tpu.memory_space<vmem>>, vector<1x384xf32>
    %4 = vector.broadcast %3 : vector<1x384xf32> to vector<8x384xf32>
    %5 = arith.addf %2, %4 : vector<8x384xf32>
    %6 = vector.extract_strided_slice %5 {offsets = [0, 0], sizes = [8, 128], strides = [1, 1]} : vector<8x384xf32> to vector<8x128xf32>
    %cst_5 = arith.constant 0.176776692 : f32
    %7 = vector.broadcast %cst_5 : f32 to vector<8x128xf32>
    %8 = arith.mulf %6, %7 : vector<8x128xf32>
    %9 = arith.truncf %8 : vector<8x128xf32> to vector<8x128xbf16>
    %c0_6 = arith.constant 0 : index
    %c0_7 = arith.constant 0 : index
    %10 = vector.load %arg4[%c0_6, %c0_7] : memref<8x128xbf16, #tpu.memory_space<vmem>>, vector<8x128xbf16>
    tpu.vector_store %arg4[%c0_6, %c0_7], %9 {strides = array<i32>} : memref<8x128xbf16, #tpu.memory_space<vmem>>, vector<8x128xbf16>,
    %11 = vector.extract_strided_slice %5 {offsets = [0, 128], sizes = [8, 128], strides = [1, 1]} : vector<8x384xf32> to vector<8x128xf32>
    %12 = arith.truncf %11 : vector<8x128xf32> to vector<8x128xbf16>
    %c0_8 = arith.constant 0 : index
    %c0_9 = arith.constant 0 : index
    %13 = vector.load %arg5[%c0_8, %c0_9] : memref<8x128xbf16, #tpu.memory_space<vmem>>, vector<8x128xbf16>
    tpu.vector_store %arg5[%c0_8, %c0_9], %12 {strides = array<i32>} : memref<8x128xbf16, #tpu.memory_space<vmem>>, vector<8x128xbf16>,
    %14 = vector.extract_strided_slice %5 {offsets = [0, 256], sizes = [8, 128], strides = [1, 1]} : vector<8x384xf32> to vector<8x128xf32>
    %15 = arith.truncf %14 : vector<8x128xf32> to vector<8x128xbf16>
    %c0_10 = arith.constant 0 : index
    %c0_11 = arith.constant 0 : index
    %16 = vector.load %arg6[%c0_10, %c0_11] : memref<8x128xbf16, #tpu.memory_space<vmem>>, vector<8x128xbf16>
    tpu.vector_store %arg6[%c0_10, %c0_11], %15 {strides = array<i32>} : memref<8x128xbf16, #tpu.memory_space<vmem>>, vector<8x128xbf16>,
    return
  }
  func.func @transform_0(%arg0: i32) -> (i32, i32) {
    %c0_i32 = arith.constant 0 : i32
    %c0_i32_0 = arith.constant 0 : i32
    return %arg0, %c0_i32 : i32, i32
  }
  func.func @transform_1(%arg0: i32) -> (i32, i32) {
    %c0_i32 = arith.constant 0 : i32
    %c0_i32_0 = arith.constant 0 : i32
    %c0_i32_1 = arith.constant 0 : i32
    return %c0_i32, %c0_i32_0 : i32, i32
  }
  func.func @transform_2(%arg0: i32) -> (i32, i32) {
    %c0_i32 = arith.constant 0 : i32
    %c0_i32_0 = arith.constant 0 : i32
    %c0_i32_1 = arith.constant 0 : i32
    return %c0_i32, %c0_i32_0 : i32, i32
  }
  func.func @transform_3(%arg0: i32) -> (i32, i32) {
    %c0_i32 = arith.constant 0 : i32
    %c0_i32_0 = arith.constant 0 : i32
    return %arg0, %c0_i32 : i32, i32
  }
  func.func @transform_4(%arg0: i32) -> (i32, i32) {
    %c0_i32 = arith.constant 0 : i32
    %c0_i32_0 = arith.constant 0 : i32
    return %arg0, %c0_i32 : i32, i32
  }
  func.func @transform_5(%arg0: i32) -> (i32, i32) {
    %c0_i32 = arith.constant 0 : i32
    %c0_i32_0 = arith.constant 0 : i32
    return %arg0, %c0_i32 : i32, i32
  }
}

</mosaic_0001>

<bundles_post_ra>
// kernel: attn_blk.3
= control target key start
LH: loop header
LB: loop body
LE: loop exit
PB: predicated region body
PF: predicated region fallthrough
CT: control target
= control target key end

     0   :  { %v311_v2 = vmov 0.0   ;;  %s357_s0 = inlined_call_operand.vmem [shape: bf16[2,8,128], index: 0, kind: input, shape index: {}]   ;;  %s358_s1 = inlined_call_operand.vmem [shape: bf16[2,8,128], index: 1, kind: input, shape index: {}]   ;;  %s359_s2 = inlined_call_operand.vmem [shape: bf16[2,8,128], index: 2, kind: input, shape index: {}]   ;;  %s360_s3 = inlined_call_operand.hbm [shape: f32[2,8,128], index: 3, kind: output, shape index: {}]  }
   0x1   :  { %v23_v0 = vld [vmem:[%s358_s1] sm:$0xf]  ;;  %v242_v1 = vld [vmem:[%s358_s1 + $0x4] sm:$0xf]  ;;  %254 = vmatprep.subr.bf16.mxu0 %v311_v2  ;;  %260 = vmatprep.subr.bf16.mxu1 %v311_v2 }
   0x2   :  { %8 = vsyncpa [#allocation3], 0  ;;  %255 = vmatpush3.bf16.xpose.msra.mxu0 %v23_v0  ;;  %261 = vmatpush3.bf16.xpose.msra.mxu1 %v242_v1  ;;  %vm312_vm0 = vmmov 0   ;;  %v22_v3 = vld [vmem:[%s357_s0] sm:$0xf]  ;;  %vm125_vm1 = vcmask 1043456  }
   0x3   :  { %256 = vmatprep.mubr.msk.bf16.mxu0 %vm312_vm0, %v311_v2  ;;  %262 = vmatprep.mubr.msk.bf16.mxu1 %vm312_vm0, %v311_v2  ;;  %v241_v4 = vld [vmem:[%s357_s0 + $0x4] sm:$0xf]  ;;  %v120_v5 = vld [vmem:[%s359_s2] sm:$0xf]  ;;  %vm121_vm2 = vcmask 64512   ;;  %s313_s0 = smov [#allocation2]  }
   0x4   :  { %266 = vmatprep.subr.bf16.mxu0 %v311_v2  ;;  %272 = vmatprep.subr.bf16.mxu1 %v311_v2  ;;  %v244_v6 = vld [vmem:[%s359_s2 + $0x4] sm:$0xf]  ;;  %v127_v7 = vsel %vm125_vm1, %v120_v5, 0  ;;  %s230_s2 = sshll.u32 %s313_s0, 4  ;;  %s231_s2 = int_to_ptr.vmem [resolvable:$true] %s230_s2 }
   0x5   :  { %v181_v8 = vsel %vm125_vm1, %v244_v6, 0  ;;  %s289_s23 = scalar_lea.vmem %s231_s2, 256  ;;  %p294_p1 = scmp.lt.s32.totalorder %s231_s2, %s231_s2 }
   0x6   :  { %p290_p0 = scmp.ne.s32.totalorder %s231_s2, %s289_s23  ;;  %p295_p2 = scmp.lt.s32.totalorder %s289_s23, %s289_s23 }
   0x8   :  { %p296_p3 = por %p295_p2, %p294_p1 }
   0x9   :  { %257 = vmatmul.mubr.bf16.vlgmr.msra.gmra.mxu0 %v22_v3  ;;  %263 = vmatmul.mubr.bf16.vlgmr.msra.gmra.mxu1 %v241_v4 }
   0xa   :  { %268 = vmatprep.mubr.msk.bf16.mxu0 %vm312_vm0, %v311_v2  ;;  %274 = vmatprep.mubr.msk.bf16.mxu1 %vm312_vm0, %v311_v2  ;;  %p297_p4 = pnand %p296_p3, %p290_p0 }
   0xb   :  { %267 = vmatpush3.bf16.msra.mxu0 %v127_v7  ;;  %273 = vmatpush3.bf16.msra.mxu1 %v181_v8 }
  0xc9   :  { %v58_v9 = vpop.f32.mrf.mxu0  ;;  %v102_v10 = vpop.f32.mrf.mxu1 }
  0xca   :  { %v108_v11 = vmax.f32 %v58_v9, %v102_v10 }
  0xcb   :  { %v258_v12 = vpop.f32.mrf.mxu0  ;;  %v264_v13 = vpop.f32.mrf.mxu1 }
  0xcc   :  { %v109_v14 = vsub.f32 %v58_v9, %v108_v11  ;;  %v112_v15 = vsub.f32 %v102_v10, %v108_v11 }
  0xcd   :  { %v61_v16 = vpop.f32.mrf.mxu0  ;;  %v105_v17 = vpop.f32.mrf.mxu1 }
  0xce   :  { %v110_v18 = vmul.f32 1.442695, %v109_v14  ;;  %v113_v19 = vmul.f32 1.442695, %v112_v15 }
  0xcf   :  { %v259_v20 = vpop.f32.mrf.mxu0  ;;  %v265_v21 = vpop.f32.mrf.mxu1 }
  0xd0   :  { %283 = vpow2.f32 %v110_v18 }
  0xd1   :  { %285 = vpow2.f32 %v113_v19 }
  0xdd   :  { %v284_v22 = vpop.eup %283 }
  0xde   :  { %v286_v23 = vpop.eup %285 }
  0xdf   :  { %v115_v24 = vadd.f32 %v286_v23, %v284_v22 }
  0xe1   :  { %287 = vrcp.f32 %v115_v24 }
  0xee   :  { %v288_v25 = vpop.eup %287 }
  0xef   :  { %v117_v26 = vmul.f32 %v288_v25, %v284_v22  ;;  %v171_v27 = vmul.f32 %v288_v25, %v286_v23 }
  0xf1   :  { %v118_v28 = vpack.c.bf16 %v117_v26, %v117_v26  ;;  %v172_v29 = vpack.c.bf16 %v171_v27, %v171_v27 }
  0xf3   :  { %269 = vmatmul.mubr.msk.bf16.vlgmr.msra.gmra.mxu0 %vm121_vm2, %v118_v28  ;;  %275 = vmatmul.mubr.msk.bf16.vlgmr.msra.gmra.mxu1 %vm121_vm2, %v172_v29 }
 0x1b3   :  { %v163_v30 = vpop.f32.mrf.mxu0  ;;  %v217_v31 = vpop.f32.mrf.mxu1 }
 0x1b4   :  { %170 = vst [vmem:[#allocation2] sm:$0xff] %v163_v30  ;;  %224 = vst [vmem:[#allocation2 + $0x8] sm:$0xff] %v217_v31 }
 0x1b5   :  { %v270_v32 = vpop.f32.mrf.mxu0  ;;  %v276_v33 = vpop.f32.mrf.mxu1 }
 0x1b7   :  { %v166_v34 = vpop.f32.mrf.mxu0  ;;  %v220_v35 = vpop.f32.mrf.mxu1 }
 0x1b8   :  { %300 = shalt.err (!%p297_p4)
}
 0x1b9   :  { %s314_s24 = smov 128   ;;  %s315_s25 = smov 8   ;;  %v271_v36 = vpop.f32.mrf.mxu0  ;;  %v277_v37 = vpop.f32.mrf.mxu1 }
 0x1ba   :  { %236 = dma.vmem_to_hbm [thread:$0]  %s231_s2, 256, %s360_s3, [#allocation3], %s314_s24, %s314_s24, %s315_s25  }
 0x1bb   :  { %309 = dma.done.wait [#allocation3], 256  }
 0x1bc   :  { %310 = vsyncadd [#allocation3], 4294967040 }
 0x1bd   :  { %240 = vsyncpa [#allocation3], 1 }

// kernel: attn_blk.2
= control target key start
LH: loop header
LB: loop body
LE: loop exit
PB: predicated region body
PF: predicated region fallthrough
CT: control target
= control target key end

     0   :  { %11 = vsyncpa [#allocation3], 0  ;;  %s846_s18 = smov 0   ;;  %s900_s0 = inlined_call_operand.vmem [shape: bf16[16,128], index: 0, kind: input, shape index: {}]   ;;  %s901_s1 = inlined_call_operand.hbm [shape: bf16[128,384], index: 1, kind: input, shape index: {}]   ;;  %s902_s2 = inlined_call_operand.vmem [shape: f32[1,384], index: 2, kind: input, shape index: {}]   ;;  %s903_s3 = inlined_call_operand.vmem [shape: bf16[16,128], index: 3, kind: output, shape index: {0}]   ;;  %s904_s4 = inlined_call_operand.vmem [shape: bf16[16,128], index: 4, kind: output, shape index: {1}]   ;;  %s905_s5 = inlined_call_operand.vmem [shape: bf16[16,128], index: 5, kind: output, shape index: {2}]  }
   0x1 LB: > { %s852_s19 = sadd.s32 4294967295, %s808_s18   ;;  %p652_p0 = scmp.ge.s32.totalorder %s808_s18, 1  ;;  %s808_s18 = sphi %s846_s18, %s17_s18  }
   0x2   : > { %p168_p1 = scmp.lt.s32.totalorder %s808_s18, 3  ;;  %s810_s20 = smov [#allocation2]  }
   0x3   : > { %s180_s21 = sshll.u32 %s810_s20, 4  ;;  %p724_p3 = scmp.eq.s32.totalorder %s852_s19, 0  ;;  %s181_s21 = int_to_ptr.vmem [resolvable:$true] %s180_s21 }
   0x4   : > { %p856_p2 = pnand %p652_p0, %p168_p1  ;;  %s783_s23 = scalar_lea.vmem %s181_s21, 3072 }
   0x5   : > { %p784_p7 = scmp.ne.s32.totalorder %s181_s21, %s783_s23  ;;  %p791_p10 = scmp.lt.s32.totalorder %s181_s21, %s181_s21 }
   0x6   : > { %p720_p4 = pneg %p856_p2  ;;  %p792_p11 = scmp.lt.s32.totalorder %s783_s23, %s783_s23 }
   0x8   : > { %p721_p5 = pnand %p724_p3, %p720_p4  ;;  %p793_p12 = por %p792_p11, %p791_p10 }
   0xa   : > { %p774_p6 = pneg %p721_p5 }
   0xc   : > { %p786_p8 = pnand %p784_p7, %p774_p6 }
   0xe   : > { %p787_p9 = pneg %p786_p8 }
  0x10   : > { %p794_p13 = pnand %p793_p12, %p787_p9 }
  0x12   : > { %797 = shalt.err (!%p794_p13)
}
  0x13   : > { %s811_s24 = smov 192   ;;  %s812_s25 = smov 12  }
  0x14   : > { %723 = dma.hbm_to_vmem [thread:$0]  (!%p721_p5), %s901_s1, 3072, %s181_s21, [#allocation3], %s811_s24, %s811_s24, %s812_s25  }
  0x15   : > { %206 = sbr.rel (%p856_p2) target bundleno = 261 (0x105), region = 32 }
  0x1a   : > { %803 = dma.done.wait (%p724_p3), [#allocation3], 3072  }
  0x1b   : > { %805 = vsyncadd (%p724_p3), [#allocation3], 4294964224  ;;  %v813_v0 = vmov 0.0   ;;  %vm814_vm0 = vmmov 0   ;;  %v815_v1 = vmov 0   ;;  %p240_p0 = scmp.lt.s32.totalorder %s852_s19, 1  ;;  %v292_v27 = vlaneseq }
  0x1c   : > { %696 = vmatprep.subr.bf16.mxu1 %v813_v0  ;;  %712 = vmatprep.mubr.msk.bf16.mxu1 %vm814_vm0, %v813_v0  ;;  %v740_v2 = vld [vmem:[#allocation2 + $0xac] ss:$12 sps:$4 sm:$0xff]   ;;  %v742_v3 = vld [vmem:[#allocation2 + $0xb0] ss:$12 sps:$4 sm:$0xff]   ;;  %v743_v4 = vld [vmem:[#allocation2 + $0xa8] ss:$12 sps:$4 sm:$0xff]  }
  0x1d   : > { %467 = vmatprep.mubr.bf16.mxu0 %v815_v1  ;;  %435 = vmatprep.subr.bf16.mxu0 %v740_v2  ;;  %v744_v5 = vld [vmem:[#allocation2 + $0x94] ss:$12 sps:$4 sm:$0xff]   ;;  %v746_v6 = vld [vmem:[#allocation2 + $0x98] ss:$12 sps:$4 sm:$0xff]   ;;  %v747_v7 = vld [vmem:[#allocation2 + $0x90] ss:$12 sps:$4 sm:$0xff]  }
  0x1e   : > { %697 = vmatpush3.bf16.msra.mxu1 %v742_v3  ;;  %436 = vmatpush1.bf16.msra.mxu0 %v743_v4  ;;  %v748_v8 = vld [vmem:[#allocation2 + $0x7c] ss:$12 sps:$4 sm:$0xff]   ;;  %v750_v9 = vld [vmem:[#allocation2 + $0x80] ss:$12 sps:$4 sm:$0xff]   ;;  %v751_v10 = vld [vmem:[#allocation2 + $0x78] ss:$12 sps:$4 sm:$0xff]  }
  0x1f   : > { %698 = vmatprep.subr.bf16.mxu1 %v813_v0  ;;  %437 = vmatprep.subr.bf16.mxu0 %v744_v5  ;;  %v752_v11 = vld [vmem:[#allocation2 + $0x64] ss:$12 sps:$4 sm:$0xff]   ;;  %v754_v12 = vld [vmem:[#allocation2 + $0x68] ss:$12 sps:$4 sm:$0xff]   ;;  %v755_v13 = vld [vmem:[#allocation2 + $0x60] ss:$12 sps:$4 sm:$0xff]  }
  0x20   : > { %v756_v14 = vld [vmem:[#allocation2 + $0x4c] ss:$12 sps:$4 sm:$0xff]   ;;  %v758_v15 = vld [vmem:[#allocation2 + $0x50] ss:$12 sps:$4 sm:$0xff]   ;;  %v759_v16 = vld [vmem:[#allocation2 + $0x48] ss:$12 sps:$4 sm:$0xff]  }
  0x21   : > { %v760_v17 = vld [vmem:[#allocation2 + $0x34] ss:$12 sps:$4 sm:$0xff]   ;;  %v762_v18 = vld [vmem:[#allocation2 + $0x38] ss:$12 sps:$4 sm:$0xff]   ;;  %v763_v19 = vld [vmem:[#allocation2 + $0x30] ss:$12 sps:$4 sm:$0xff]  }
  0x22   : > { %699 = vmatpush3.bf16.msra.mxu1 %v746_v6  ;;  %438 = vmatpush1.bf16.msra.mxu0 %v747_v7  ;;  %v764_v20 = vld [vmem:[#allocation2 + $0x1c] ss:$12 sps:$4 sm:$0xff]   ;;  %s908_s19 = smov (!%p240_p0, %s852_s19), 1  ;;  %v766_v21 = vld [vmem:[#allocation2 + $0x20] ss:$12 sps:$4 sm:$0xff]   ;;  %v293_v28 = vshrl.u32 %v292_v27, 7 }
  0x23   : > { %700 = vmatprep.subr.bf16.mxu1 %v813_v0  ;;  %439 = vmatprep.subr.bf16.mxu0 %v748_v8  ;;  %v767_v22 = vld [vmem:[#allocation2 + $0x18] ss:$12 sps:$4 sm:$0xff]   ;;  %s876_s28 = sshll.u32 %s908_s19, 2  ;;  %v770_v24 = vld [vmem:[#allocation2 + $0x8] ss:$12 sps:$4 sm:$0xff]  }
  0x24   : > { %v768_v23 = vld [vmem:[#allocation2 + $0x4] ss:$12 sps:$4 sm:$0xff]   ;;  %v771_v25 = vld [vmem:[#allocation2] ss:$12 sps:$4 sm:$0xff]   ;;  %s243_s6 = scalar_lea.vmem %s900_s0, %s876_s28  ;;  %v302_v29 = vsub.s32 2, %v293_v28  ;;  %v294_v31 = vsub.s32 0, %v293_v28  ;;  %s255_s11 = scalar_lea.vmem %s905_s5, %s876_s28 }
  0x25   : > { %v257_v26 = vld [vmem:[%s243_s6] sm:$0xf]  ;;  %v298_v32 = vsub.s32 1, %v293_v28  ;;  %s247_s14 = scalar_lea.vmem %s903_s3, %s876_s28  ;;  %s251_s17 = scalar_lea.vmem %s904_s4, %s876_s28 }
  0x26   : > { %701 = vmatpush3.bf16.msra.mxu1 %v750_v9  ;;  %440 = vmatpush1.bf16.msra.mxu0 %v751_v10  ;;  %v290_v30 = vld [vmem:[%s902_s2] sm:$0x7] }
  0x27   : > { %702 = vmatprep.subr.bf16.mxu1 %v813_v0  ;;  %441 = vmatprep.subr.bf16.mxu0 %v752_v11  ;;  %v303_v33 = vrot.slane %v290_v30, %v302_v29  ;;  %v295_v34 = vrot.slane %v290_v30, %v294_v31  ;;  %v299_v36 = vrot.slane %v290_v30, %v298_v32 }
  0x2a   : > { %703 = vmatpush3.bf16.msra.mxu1 %v754_v12  ;;  %442 = vmatpush1.bf16.msra.mxu0 %v755_v13 }
  0x2b   : > { %704 = vmatprep.subr.bf16.mxu1 %v813_v0  ;;  %443 = vmatprep.subr.bf16.mxu0 %v756_v14 }
  0x2e   : > { %705 = vmatpush3.bf16.msra.mxu1 %v758_v15  ;;  %444 = vmatpush1.bf16.msra.mxu0 %v759_v16 }
  0x2f   : > { %706 = vmatprep.subr.bf16.mxu1 %v813_v0  ;;  %445 = vmatprep.subr.bf16.mxu0 %v760_v17 }
  0x32   : > { %707 = vmatpush3.bf16.msra.mxu1 %v762_v18  ;;  %446 = vmatpush1.bf16.msra.mxu0 %v763_v19 }
  0x33   : > { %708 = vmatprep.subr.bf16.mxu1 %v813_v0  ;;  %447 = vmatprep.subr.bf16.mxu0 %v764_v20 }
  0x36   : > { %709 = vmatpush3.bf16.msra.mxu1 %v766_v21  ;;  %448 = vmatpush1.bf16.msra.mxu0 %v767_v22 }
  0x37   : > { %710 = vmatprep.subr.bf16.mxu1 %v813_v0  ;;  %449 = vmatprep.subr.bf16.mxu0 %v768_v23 }
  0x3a   : > { %711 = vmatpush3.bf16.msra.mxu1 %v770_v24  ;;  %450 = vmatpush1.bf16.msra.mxu0 %v771_v25 }
  0x3d   : > { %713 = vmatmul.mubr.bf16.vlgmr.msra.gmra.mxu1 %v257_v26  ;;  %468 = vmatmul.mubr.bf16.vlgmr.msra.gmra.mxu0 %v257_v26 }
  0xfd   : > { %v510_v35 = vpop.f32.mrf.mxu1  ;;  %v469_v38 = vpop.f32.mrf.mxu0 }
  0xfe   : > { %v511_v37 = vadd.f32 %v510_v35, %v303_v33  ;;  %v470_v39 = vadd.f32 %v469_v38, %v295_v34 }
  0xff   : > { %v714_v40 = vpop.f32.mrf.mxu1  ;;  %v471_v42 = vpop.f32.mrf.mxu0 }
 0x100   : > { %v521_v41 = vpack.c.bf16 %v511_v37, %v511_v37  ;;  %v516_v43 = vmul.f32 0.17677669, %v470_v39  ;;  %v472_v44 = vadd.f32 %v471_v42, %v299_v36 }
 0x101   : > { %v513_v45 = vpop.f32.mrf.mxu1  ;;  %v473_v46 = vpop.f32.mrf.mxu0 }
 0x102   : > { %522 = vst [vmem:[%s255_s11] sm:$0xf] %v521_v41  ;;  %v517_v47 = vpack.c.bf16 %v516_v43, %v516_v43  ;;  %v519_v48 = vpack.c.bf16 %v472_v44, %v472_v44 }
 0x103   : > { %v715_v49 = vpop.f32.mrf.mxu1  ;;  %v474_v50 = vpop.f32.mrf.mxu0 }
 0x104   : > { %518 = vst [vmem:[%s247_s14] sm:$0xf] %v517_v47  ;;  %520 = vst [vmem:[%s251_s17] sm:$0xf] %v519_v48 }
 0x105 PF: > { %s17_s18 = sadd.s32 1, %s808_s18  }
 0x106   : > { %p14_p1 = scmp.ge.s32.totalorder %s17_s18, 4  }
 0x108   :  { %16 = sbr.rel (!%p14_p1) target bundleno = 1 (0x1), region = 91 }
 0x10d   :  { %570 = vsyncpa [#allocation3], 1 }
 0x10e   :  { %572 = vsyncpa [#allocation3 + $0x1], 1 }

</bundles_post_ra>
